<compile_context>
chip_gen: v6e
topology: v6e:2x2x1
jax: 0.10.0
libtpu: 0.0.40
codegen_flags: <defaults>
</compile_context>

<pallas_src>
import functools

import jax
import jax.numpy as jnp
from jax import lax
from jax.experimental import pallas as pl
from jax.experimental.pallas import tpu as pltpu


def _round_up(n, m):
    return ((n + m - 1) // m) * m


def _mlp_kernel(x_ref, w1_ref, b1_ref, w2_ref, b2_ref, w3_ref, b3_ref, o_ref):
    cdt = x_ref.dtype  # compute dtype for the MXU inputs (f32 or bf16)

    x = x_ref[...]                    # (TB, F)
    b1 = b1_ref[...]                  # (1, 64)  f32
    b2 = b2_ref[...]                  # (1, 32)  f32
    b3 = b3_ref[0, 0]                 # scalar   f32 (SMEM)

    # fc1 + ReLU (f32 accumulate)
    h1 = jnp.dot(x, w1_ref[...], preferred_element_type=jnp.float32) + b1
    h1 = jnp.maximum(h1, 0.0)

    # fc2 + ReLU (f32 accumulate)
    h2 = jnp.dot(h1.astype(cdt), w2_ref[...], preferred_element_type=jnp.float32) + b2
    h2 = jnp.maximum(h2, 0.0)

    # fc3 (out_features = 1): compute as w3_row @ h2^T so the result is a lane-dense
    # (1, TB) row instead of a lane-width-1 (TB, 1) column of masked stores.
    z = lax.dot_general(
        w3_ref[...],                  # (1, 32)
        h2.astype(cdt),               # (TB, 32)
        dimension_numbers=(((1,), (1,)), ((), ())),
        preferred_element_type=jnp.float32,
    )                                  # (1, TB)

    o_ref[...] = jax.nn.sigmoid(z + b3)


@functools.partial(jax.jit, static_argnames=("block_b", "compute_dtype"))
def credit_risk_nn(x, params, *, block_b=2048, compute_dtype=jnp.float32):
    """Forward pass of CreditRiskNN via one batch-tiled pallas_call.

    x: (B, F) float32
    params: dict with w1 (F,64), b1 (1,64), w2 (64,32), b2 (1,32), w3 (32,1), b3 (1,1)
    returns: (B, 1) float32 in (0, 1)
    """
    B, F = x.shape

    # Batch tile: multiple of 128 (clean MXU M-cadence on v5e, lane-dense output row),
    # capped so small batches use a single small tile.
    tb = min(block_b, _round_up(B, 128))
    tb = _round_up(tb, 128)
    b_pad = _round_up(B, tb)
    n_tiles = b_pad // tb

    if b_pad != B:
        x = jnp.pad(x, ((0, b_pad - B), (0, 0)))

    # Dot inputs in compute_dtype (bf16 halves HBM traffic on v6e/v7x); bias math in f32.
    xc = x.astype(compute_dtype)
    w1 = params["w1"].astype(compute_dtype)           # (F, 64)
    w2 = params["w2"].astype(compute_dtype)           # (64, 32)
    w3 = params["w3"].reshape(1, 32).astype(compute_dtype)  # (1, 32) row form
    b1 = params["b1"].astype(jnp.float32)             # (1, 64)
    b2 = params["b2"].astype(jnp.float32)             # (1, 32)
    b3 = params["b3"].astype(jnp.float32)             # (1, 1)  -> SMEM scalar

    itemsize = jnp.dtype(compute_dtype).itemsize
    param_bytes = (w1.size + w2.size + w3.size) * itemsize + (b1.size + b2.size + b3.size) * 4
    cost = pl.CostEstimate(
        flops=2 * b_pad * (F * 64 + 64 * 32 + 32),
        transcendentals=b_pad,  # sigmoid
        bytes_accessed=b_pad * F * itemsize + b_pad * 4 + param_bytes,
    )

    out = pl.pallas_call(
        _mlp_kernel,
        out_shape=jax.ShapeDtypeStruct((1, b_pad), jnp.float32),
        grid=(n_tiles,),
        in_specs=[
            pl.BlockSpec((tb, F), lambda i: (i, 0)),     # x: tiled along batch
            pl.BlockSpec((F, 64), lambda i: (0, 0)),     # w1: VMEM-resident
            pl.BlockSpec((1, 64), lambda i: (0, 0)),     # b1
            pl.BlockSpec((64, 32), lambda i: (0, 0)),    # w2
            pl.BlockSpec((1, 32), lambda i: (0, 0)),     # b2
            pl.BlockSpec((1, 32), lambda i: (0, 0)),     # w3 (row form)
            pl.BlockSpec(memory_space=pltpu.MemorySpace.SMEM),  # b3 scalar
        ],
        out_specs=pl.BlockSpec((1, tb), lambda i: (0, i)),  # lane-dense output row
        compiler_params=pltpu.CompilerParams(
            dimension_semantics=("parallel",),
            vmem_limit_bytes=32 * 1024 * 1024,  # well within v7x scoped VMEM
        ),
        cost_estimate=cost,
    )(xc, w1, b1, w2, b2, w3, b3)

    return out[0, :B].reshape(B, 1)


def init_params(key, input_size):
    """Deterministic synthetic parameters matching nn.Linear shapes (transposed)."""
    k1, k2, k3, k4, k5, k6 = jax.random.split(key, 6)

    def uniform(k, shape, fan_in):
        bound = 1.0 / jnp.sqrt(float(fan_in))
        return jax.random.uniform(k, shape, jnp.float32, -bound, bound)

    return {
        "w1": uniform(k1, (input_size, 64), input_size),
        "b1": uniform(k2, (1, 64), input_size),
        "w2": uniform(k3, (64, 32), 64),
        "b2": uniform(k4, (1, 32), 64),
        "w3": uniform(k5, (32, 1), 32),
        "b3": uniform(k6, (1, 1), 32),
    }


def _reference(x, p):
    h1 = jnp.maximum(x @ p["w1"] + p["b1"], 0.0)
    h2 = jnp.maximum(h1 @ p["w2"] + p["b2"], 0.0)
    return jax.nn.sigmoid(h2 @ p["w3"] + p["b3"])


if __name__ == "__main__":
    key = jax.random.PRNGKey(0)
    kx, kx2, kp = jax.random.split(key, 3)

    batch, input_size = 8, 16  # small shapes; input_size = number of credit features
    x = jax.random.normal(kx, (batch, input_size), jnp.float32)
    params = init_params(kp, input_size)
    ref = _reference(x, params)

    # f32 path: matches the PyTorch module numerics.
    out = jax.block_until_ready(credit_risk_nn(x, params))
    assert out.shape == (batch, 1)
    assert jnp.allclose(out, ref, atol=1e-5, rtol=1e-5)

    # bf16-input path (bandwidth optimization for v6e/v7x): looser tolerance.
    out_bf16 = jax.block_until_ready(credit_risk_nn(x, params, compute_dtype=jnp.bfloat16))
    assert jnp.allclose(out_bf16, ref, atol=2e-2)

    # Multi-tile + padding path: B not a multiple of the batch tile.
    x2 = jax.random.normal(kx2, (300, input_size), jnp.float32)
    out2 = jax.block_until_ready(credit_risk_nn(x2, params, block_b=128))
    assert out2.shape == (300, 1)
    assert jnp.allclose(out2, _reference(x2, params), atol=1e-5, rtol=1e-5)

    print("KERNEL_OK")
</pallas_src>

<mosaic_0001>
module attributes {stable_mosaic.version = 11 : i64} {
  func.func @_mlp_kernel(%arg0: i32, %arg1: memref<128x16xf32, #tpu.memory_space<vmem>>, %arg2: memref<16x64xf32, #tpu.memory_space<vmem>>, %arg3: memref<1x64xf32, #tpu.memory_space<vmem>>, %arg4: memref<64x32xf32, #tpu.memory_space<vmem>>, %arg5: memref<1x32xf32, #tpu.memory_space<vmem>>, %arg6: memref<1x32xf32, #tpu.memory_space<vmem>>, %arg7: memref<1x1xf32, #tpu.memory_space<smem>>, %arg8: memref<1x128xf32, #tpu.memory_space<vmem>>) attributes {dimension_semantics = [#tpu.dimension_semantics<parallel>], iteration_bounds = array<i64: 1>, scalar_prefetch = 0 : i64, scratch_operands = 0 : i64, tpu.core_type = #tpu.core_type<tc>, window_params = [{transform_indices = @transform_0, window_bounds = array<i64: 128, 16>}, {pipeline_mode = #tpu.pipeline_mode<synchronous>, transform_indices = @transform_1, window_bounds = array<i64: 16, 64>}, {pipeline_mode = #tpu.pipeline_mode<synchronous>, transform_indices = @transform_2, window_bounds = array<i64: 1, 64>}, {pipeline_mode = #tpu.pipeline_mode<synchronous>, transform_indices = @transform_3, window_bounds = array<i64: 64, 32>}, {pipeline_mode = #tpu.pipeline_mode<synchronous>, transform_indices = @transform_4, window_bounds = array<i64: 1, 32>}, {pipeline_mode = #tpu.pipeline_mode<synchronous>, transform_indices = @transform_5, window_bounds = array<i64: 1, 32>}, {transform_indices = @transform_6, window_bounds = array<i64: 1, 1>}, {transform_indices = @transform_7, window_bounds = array<i64: 1, 128>}]} {
    %c0 = arith.constant 0 : index
    %c0_0 = arith.constant 0 : index
    %0 = vector.load %arg1[%c0, %c0_0] : memref<128x16xf32, #tpu.memory_space<vmem>>, vector<128x16xf32>
    %c0_1 = arith.constant 0 : index
    %c0_2 = arith.constant 0 : index
    %1 = vector.load %arg3[%c0_1, %c0_2] : memref<1x64xf32, #tpu.memory_space<vmem>>, vector<1x64xf32>
    %c0_3 = arith.constant 0 : index
    %c0_4 = arith.constant 0 : index
    %2 = vector.load %arg5[%c0_3, %c0_4] : memref<1x32xf32, #tpu.memory_space<vmem>>, vector<1x32xf32>
    %c0_5 = arith.constant 0 : index
    %c0_6 = arith.constant 0 : index
    %3 = memref.load %arg7[%c0_5, %c0_6] : memref<1x1xf32, #tpu.memory_space<smem>>
    %c0_7 = arith.constant 0 : index
    %c0_8 = arith.constant 0 : index
    %4 = vector.load %arg2[%c0_7, %c0_8] : memref<16x64xf32, #tpu.memory_space<vmem>>, vector<16x64xf32>
    %cst = arith.constant dense<0.000000e+00> : vector<128x64xf32>
    %5 = tpu.matmul %0, %4, %cst {dimension_numbers = #tpu.dot_dimension_numbers<[1], [0], [0], [1], [0, 0, 1, 1], [], []>} : vector<128x16xf32>, vector<16x64xf32>, vector<128x64xf32> -> vector<128x64xf32>
    %6 = vector.broadcast %1 : vector<1x64xf32> to vector<128x64xf32>
    %7 = arith.addf %5, %6 : vector<128x64xf32>
    %cst_9 = arith.constant 0.000000e+00 : f32
    %8 = vector.broadcast %cst_9 : f32 to vector<128x64xf32>
    %9 = arith.maximumf %7, %8 : vector<128x64xf32>
    %c0_10 = arith.constant 0 : index
    %c0_11 = arith.constant 0 : index
    %10 = vector.load %arg4[%c0_10, %c0_11] : memref<64x32xf32, #tpu.memory_space<vmem>>, vector<64x32xf32>
    %cst_12 = arith.constant dense<0.000000e+00> : vector<128x32xf32>
    %11 = tpu.matmul %9, %10, %cst_12 {dimension_numbers = #tpu.dot_dimension_numbers<[1], [0], [0], [1], [0, 0, 1, 1], [], []>} : vector<128x64xf32>, vector<64x32xf32>, vector<128x32xf32> -> vector<128x32xf32>
    %12 = vector.broadcast %2 : vector<1x32xf32> to vector<128x32xf32>
    %13 = arith.addf %11, %12 : vector<128x32xf32>
    %cst_13 = arith.constant 0.000000e+00 : f32
    %14 = vector.broadcast %cst_13 : f32 to vector<128x32xf32>
    %15 = arith.maximumf %13, %14 : vector<128x32xf32>
    %c0_14 = arith.constant 0 : index
    %c0_15 = arith.constant 0 : index
    %16 = vector.load %arg6[%c0_14, %c0_15] : memref<1x32xf32, #tpu.memory_space<vmem>>, vector<1x32xf32>
    %cst_16 = arith.constant dense<0.000000e+00> : vector<1x128xf32>
    %17 = tpu.matmul %16, %15, %cst_16 {dimension_numbers = #tpu.dot_dimension_numbers<[1], [1], [0], [0], [0, 0, 1, 0], [], []>} : vector<1x32xf32>, vector<128x32xf32>, vector<1x128xf32> -> vector<1x128xf32>
    %18 = vector.broadcast %3 : f32 to vector<1x128xf32>
    %19 = arith.addf %17, %18 : vector<1x128xf32>
    %20 = arith.negf %19 : vector<1x128xf32>
    %21 = math.exp %20 : vector<1x128xf32>
    %cst_17 = arith.constant 1.000000e+00 : f32
    %22 = vector.broadcast %cst_17 : f32 to vector<1x128xf32>
    %23 = arith.addf %22, %21 : vector<1x128xf32>
    %24 = arith.divf %22, %23 : vector<1x128xf32>
    %c0_18 = arith.constant 0 : index
    %c0_19 = arith.constant 0 : index
    %25 = vector.load %arg8[%c0_18, %c0_19] : memref<1x128xf32, #tpu.memory_space<vmem>>, vector<1x128xf32>
    tpu.vector_store %arg8[%c0_18, %c0_19], %24 {strides = array<i32>} : memref<1x128xf32, #tpu.memory_space<vmem>>, vector<1x128xf32>,
    return
  }
  func.func @transform_0(%arg0: i32) -> (i32, i32) {
    %c0_i32 = arith.constant 0 : i32
    %c0_i32_0 = arith.constant 0 : i32
    return %arg0, %c0_i32 : i32, i32
  }
  func.func @transform_1(%arg0: i32) -> (i32, i32) {
    %c0_i32 = arith.constant 0 : i32
    %c0_i32_0 = arith.constant 0 : i32
    %c0_i32_1 = arith.constant 0 : i32
    return %c0_i32, %c0_i32_0 : i32, i32
  }
  func.func @transform_2(%arg0: i32) -> (i32, i32) {
    %c0_i32 = arith.constant 0 : i32
    %c0_i32_0 = arith.constant 0 : i32
    %c0_i32_1 = arith.constant 0 : i32
    return %c0_i32, %c0_i32_0 : i32, i32
  }
  func.func @transform_3(%arg0: i32) -> (i32, i32) {
    %c0_i32 = arith.constant 0 : i32
    %c0_i32_0 = arith.constant 0 : i32
    %c0_i32_1 = arith.constant 0 : i32
    return %c0_i32, %c0_i32_0 : i32, i32
  }
  func.func @transform_4(%arg0: i32) -> (i32, i32) {
    %c0_i32 = arith.constant 0 : i32
    %c0_i32_0 = arith.constant 0 : i32
    %c0_i32_1 = arith.constant 0 : i32
    return %c0_i32, %c0_i32_0 : i32, i32
  }
  func.func @transform_5(%arg0: i32) -> (i32, i32) {
    %c0_i32 = arith.constant 0 : i32
    %c0_i32_0 = arith.constant 0 : i32
    %c0_i32_1 = arith.constant 0 : i32
    return %c0_i32, %c0_i32_0 : i32, i32
  }
  func.func @transform_6(%arg0: i32) -> (i32, i32) {
    %c0_i32 = arith.constant 0 : i32
    %c0_i32_0 = arith.constant 0 : i32
    %c0_i32_1 = arith.constant 0 : i32
    return %c0_i32, %c0_i32_0 : i32, i32
  }
  func.func @transform_7(%arg0: i32) -> (i32, i32) {
    %c0_i32 = arith.constant 0 : i32
    %c0_i32_0 = arith.constant 0 : i32
    return %c0_i32, %arg0 : i32, i32
  }
}

</mosaic_0001>

<bundles_post_ra>
// kernel: credit_risk_nn.1
= control target key start
LH: loop header
LB: loop body
LE: loop exit
PB: predicated region body
PF: predicated region fallthrough
CT: control target
= control target key end

     0   :  { %vm54_vm0 = vcmask 130048   ;;  %vm278_vm1 = vcmask 523264   ;;  %vm844_vm2 = vmmov 0   ;;  %vm490_vm3 = vcmask 261120   ;;  %s1053_s1 = inlined_call_operand.vmem [shape: f32[16,64], index: 1, kind: input, shape index: {}]   ;;  %s1054_s0 = inlined_call_operand.vmem [shape: f32[128,16], index: 0, kind: input, shape index: {}]   ;;  %s1055_s3 = inlined_call_operand.vmem [shape: f32[64,32], index: 3, kind: input, shape index: {}]   ;;  %s1056_s2 = inlined_call_operand.vmem [shape: f32[1,64], index: 2, kind: input, shape index: {}]   ;;  %s1057_s4 = inlined_call_operand.vmem [shape: f32[1,32], index: 4, kind: input, shape index: {}]   ;;  %s1058_s5 = inlined_call_operand.vmem [shape: f32[1,32], index: 5, kind: input, shape index: {}]   ;;  %s1059_s6 = inlined_call_operand.<no memory space> [shape: f32[1,1], index: 6, kind: input, shape index: {}]   ;;  %s1060_s7 = inlined_call_operand.vmem [shape: f32[1,128], index: 7, kind: output, shape index: {}]  }
   0x1   :  { %v47_v0 = vld [vmem:[%s1053_s1 + $0x8] sm:$0xff]  ;;  %v46_v1 = vld [vmem:[%s1053_s1] sm:$0xff]  ;;  %v29_v4 = vld [vmem:[%s1054_s0 + $0x10] sm:$0xff] }
   0x2   :  { %v27_v2 = vld [vmem:[%s1054_s0] sm:$0xff]  ;;  %734 = vmatprep.subr.mxu1 %v47_v0  ;;  %v28_v3 = vld [vmem:[%s1054_s0 + $0x8] sm:$0xff]  ;;  %v30_v5 = vld [vmem:[%s1054_s0 + $0x18] sm:$0xff] }
   0x3   :  { %738 = vmatprep.mubr.msk.f32.mxu1 %vm54_vm0, %v27_v2  ;;  %735 = vmatpush3.msra.mxu1 %v47_v0  ;;  %v271_v6 = vld [vmem:[%s1055_s3 + $0x38] sm:$0xff]  ;;  %v270_v7 = vld [vmem:[%s1055_s3 + $0x30] sm:$0xff]  ;;  %v31_v8 = vld [vmem:[%s1054_s0 + $0x20] sm:$0xff] }
   0x4   :  { %736 = vmatprep.subr.mxu1 %v46_v1  ;;  %v269_v9 = vld [vmem:[%s1055_s3 + $0x28] sm:$0xff]  ;;  %v268_v11 = vld [vmem:[%s1055_s3 + $0x20] sm:$0xff]  ;;  %v33_v12 = vld [vmem:[%s1054_s0 + $0x30] sm:$0xff] }
   0x5   :  { %737 = vmatpush3.msra.mxu1 %v46_v1  ;;  %v32_v10 = vld [vmem:[%s1054_s0 + $0x28] sm:$0xff]  ;;  %v267_v13 = vld [vmem:[%s1055_s3 + $0x18] sm:$0xff]  ;;  %v266_v15 = vld [vmem:[%s1055_s3 + $0x10] sm:$0xff] }
   0x6   :  { %739 = vmatmul.mubr.msk.f32.vlgmr.msra.gmra.mxu1 %vm54_vm0, %v28_v3  ;;  %762 = vmatprep.subr.mxu1 %v271_v6  ;;  %v34_v14 = vld [vmem:[%s1054_s0 + $0x38] sm:$0xff]  ;;  %v35_v16 = vld [vmem:[%s1054_s0 + $0x40] sm:$0xff]  ;;  %v265_v17 = vld [vmem:[%s1055_s3 + $0x8] sm:$0xff] }
   0x7   :  { %741 = vmatprep.mubr.msk.f32.mxu1 %vm54_vm0, %v29_v4  ;;  %763 = vmatpush3.msra.mxu1 %v271_v6  ;;  %v36_v18 = vld [vmem:[%s1054_s0 + $0x48] sm:$0xff]  ;;  %v37_v19 = vld [vmem:[%s1054_s0 + $0x50] sm:$0xff]  ;;  %v38_v20 = vld [vmem:[%s1054_s0 + $0x58] sm:$0xff] }
   0x8   :  { %764 = vmatprep.subr.mxu1 %v270_v7  ;;  %v39_v21 = vld [vmem:[%s1054_s0 + $0x60] sm:$0xff]  ;;  %v40_v22 = vld [vmem:[%s1054_s0 + $0x68] sm:$0xff]  ;;  %v41_v23 = vld [vmem:[%s1054_s0 + $0x70] sm:$0xff] }
   0x9   :  { %765 = vmatpush3.msra.mxu1 %v270_v7  ;;  %v42_v24 = vld [vmem:[%s1054_s0 + $0x78] sm:$0xff]  ;;  %v264_v25 = vld [vmem:[%s1055_s3] sm:$0xff] }
   0xa   :  { %742 = vmatmul.mubr.msk.f32.gmra.mxu1 %vm54_vm0, %v30_v5  ;;  %766 = vmatprep.subr.mxu1 %v269_v9  ;;  %v623_v26 = vld [vmem:[%s1056_s2] ss:$0 sm:$0xff] }
   0xb   :  { %744 = vmatprep.mubr.msk.f32.mxu1 %vm54_vm0, %v31_v8  ;;  %767 = vmatpush3.msra.mxu1 %v269_v9 }
   0xc   :  { %768 = vmatprep.subr.mxu1 %v268_v11 }
   0xd   :  { %769 = vmatpush3.msra.mxu1 %v268_v11  ;;  %v843_v11 = vmov 0.0  }
   0xe   :  { %745 = vmatmul.mubr.msk.f32.gmra.mxu1 %vm54_vm0, %v32_v10  ;;  %770 = vmatprep.subr.mxu1 %v267_v13 }
   0xf   :  { %747 = vmatprep.mubr.msk.f32.mxu1 %vm54_vm0, %v33_v12  ;;  %771 = vmatpush3.msra.mxu1 %v267_v13 }
  0x10   :  { %772 = vmatprep.subr.mxu1 %v266_v15  ;;  %802 = vmatprep.subr.mxu0 %v843_v11 }
  0x11   :  { %773 = vmatpush3.msra.mxu1 %v266_v15  ;;  %834 = vmatprep.mubr.msk.f32.mxu0 %vm844_vm2, %v843_v11 }
  0x12   :  { %748 = vmatmul.mubr.msk.f32.gmra.mxu1 %vm54_vm0, %v34_v14  ;;  %774 = vmatprep.subr.mxu1 %v265_v17 }
  0x13   :  { %750 = vmatprep.mubr.msk.f32.mxu1 %vm54_vm0, %v35_v16  ;;  %775 = vmatpush3.msra.mxu1 %v265_v17 }
  0x14   :  { %776 = vmatprep.subr.mxu1 %v264_v25 }
  0x15   :  { %777 = vmatpush3.msra.mxu1 %v264_v25 }
  0x16   :  { %751 = vmatmul.mubr.msk.f32.gmra.mxu1 %vm54_vm0, %v36_v18 }
  0x17   :  { %753 = vmatprep.mubr.msk.f32.mxu1 %vm54_vm0, %v37_v19 }
  0x1a   :  { %754 = vmatmul.mubr.msk.f32.gmra.mxu1 %vm54_vm0, %v38_v20 }
  0x1b   :  { %756 = vmatprep.mubr.msk.f32.mxu1 %vm54_vm0, %v39_v21 }
  0x1e   :  { %757 = vmatmul.mubr.msk.f32.gmra.mxu1 %vm54_vm0, %v40_v22 }
  0x1f   :  { %759 = vmatprep.mubr.msk.f32.mxu1 %vm54_vm0, %v41_v23 }
  0x22   :  { %760 = vmatmul.mubr.msk.f32.gmra.mxu1 %vm54_vm0, %v42_v24 }
  0xc6   :  { %v740_v27 = vpop.f32.mrf.mxu1 }
  0xc7   :  { %v175_v28 = vadd.f32 %v740_v27, %v623_v26 }
  0xc8   :  { %v169_v29 = vpop.f32.mrf.mxu1 }
  0xc9   :  { %v170_v30 = vadd.f32 %v623_v26, %v169_v29  ;;  %v249_v33 = vmax.f32 %v175_v28, 0.0 }
  0xca   :  { %v743_v31 = vpop.f32.mrf.mxu1 }
  0xcb   :  { %v248_v32 = vmax.f32 %v170_v30, 0.0  ;;  %v185_v34 = vadd.f32 %v743_v31, %v623_v26 }
  0xcc   :  { %v179_v35 = vpop.f32.mrf.mxu1 }
  0xcd   :  { %v180_v36 = vadd.f32 %v623_v26, %v179_v35  ;;  %778 = vmatprep.mubr.msk.f32.mxu1 %vm278_vm1, %v248_v32  ;;  %v251_v39 = vmax.f32 %v185_v34, 0.0 }
  0xce   :  { %v746_v37 = vpop.f32.mrf.mxu1  ;;  %779 = vmatmul.mubr.msk.f32.vlgmr.msra.gmra.mxu1 %vm278_vm1, %v249_v33 }
  0xcf   :  { %v250_v38 = vmax.f32 %v180_v36, 0.0  ;;  %v195_v40 = vadd.f32 %v746_v37, %v623_v26 }
  0xd0   :  { %v189_v41 = vpop.f32.mrf.mxu1 }
  0xd1   :  { %v190_v42 = vadd.f32 %v623_v26, %v189_v41  ;;  %781 = vmatprep.mubr.msk.f32.mxu1 %vm278_vm1, %v250_v38  ;;  %v253_v45 = vmax.f32 %v195_v40, 0.0 }
  0xd2   :  { %v749_v43 = vpop.f32.mrf.mxu1  ;;  %782 = vmatmul.mubr.msk.f32.gmra.mxu1 %vm278_vm1, %v251_v39 }
  0xd3   :  { %v252_v44 = vmax.f32 %v190_v42, 0.0  ;;  %v205_v46 = vadd.f32 %v749_v43, %v623_v26 }
  0xd4   :  { %v199_v47 = vpop.f32.mrf.mxu1 }
  0xd5   :  { %v200_v48 = vadd.f32 %v623_v26, %v199_v47  ;;  %784 = vmatprep.mubr.msk.f32.mxu1 %vm278_vm1, %v252_v44  ;;  %v255_v51 = vmax.f32 %v205_v46, 0.0 }
  0xd6   :  { %v752_v49 = vpop.f32.mrf.mxu1  ;;  %785 = vmatmul.mubr.msk.f32.gmra.mxu1 %vm278_vm1, %v253_v45 }
  0xd7   :  { %v254_v50 = vmax.f32 %v200_v48, 0.0  ;;  %v215_v52 = vadd.f32 %v752_v49, %v623_v26 }
  0xd8   :  { %v209_v53 = vpop.f32.mrf.mxu1 }
  0xd9   :  { %v210_v54 = vadd.f32 %v623_v26, %v209_v53  ;;  %787 = vmatprep.mubr.msk.f32.mxu1 %vm278_vm1, %v254_v50  ;;  %v257_v57 = vmax.f32 %v215_v52, 0.0 }
  0xda   :  { %v755_v55 = vpop.f32.mrf.mxu1  ;;  %788 = vmatmul.mubr.msk.f32.gmra.mxu1 %vm278_vm1, %v255_v51 }
  0xdb   :  { %v256_v56 = vmax.f32 %v210_v54, 0.0  ;;  %v225_v58 = vadd.f32 %v755_v55, %v623_v26 }
  0xdc   :  { %v219_v59 = vpop.f32.mrf.mxu1 }
  0xdd   :  { %v220_v60 = vadd.f32 %v623_v26, %v219_v59  ;;  %790 = vmatprep.mubr.msk.f32.mxu1 %vm278_vm1, %v256_v56  ;;  %v259_v63 = vmax.f32 %v225_v58, 0.0 }
  0xde   :  { %v758_v61 = vpop.f32.mrf.mxu1  ;;  %791 = vmatmul.mubr.msk.f32.gmra.mxu1 %vm278_vm1, %v257_v57 }
  0xdf   :  { %v258_v62 = vmax.f32 %v220_v60, 0.0  ;;  %v235_v0 = vadd.f32 %v758_v61, %v623_v26  ;;  %v488_v61 = vld [vmem:[%s1058_s5] sm:$0x1] }
  0xe0   :  { %v229_v1 = vpop.f32.mrf.mxu1 }
  0xe1   :  { %v230_v2 = vadd.f32 %v623_v26, %v229_v1  ;;  %793 = vmatprep.mubr.msk.f32.mxu1 %vm278_vm1, %v258_v62  ;;  %v261_v5 = vmax.f32 %v235_v0, 0.0  ;;  %v489_v62 = vstv %s1059_s6 }
  0xe2   :  { %v761_v3 = vpop.f32.mrf.mxu1  ;;  %794 = vmatmul.mubr.msk.f32.gmra.mxu1 %vm278_vm1, %v259_v63 }
  0xe3   :  { %v260_v4 = vmax.f32 %v230_v2, 0.0  ;;  %v245_v6 = vadd.f32 %v761_v3, %v623_v26 }
  0xe4   :  { %v239_v7 = vpop.f32.mrf.mxu1 }
  0xe5   :  { %v240_v8 = vadd.f32 %v623_v26, %v239_v7  ;;  %796 = vmatprep.mubr.msk.f32.mxu1 %vm278_vm1, %v260_v4  ;;  %v263_v10 = vmax.f32 %v245_v6, 0.0  ;;  %v640_v26 = vld [vmem:[%s1057_s4] ss:$0 sm:$0xff] }
  0xe6   :  { %797 = vmatmul.mubr.msk.f32.gmra.mxu1 %vm278_vm1, %v261_v5 }
  0xe7   :  { %v262_v9 = vmax.f32 %v240_v8, 0.0 }
  0xe9   :  { %799 = vmatprep.mubr.msk.f32.mxu1 %vm278_vm1, %v262_v9 }
  0xea   :  { %800 = vmatmul.mubr.msk.f32.gmra.mxu1 %vm278_vm1, %v263_v10 }
 0x18e   :  { %v1000_v12 = vpop.f32.mrf.mxu1 }
 0x18f   :  { %v399_v56 = vadd.f32 %v1000_v12, %v640_v26 }
 0x190   :  { %v1002_v13 = vpop.f32.mrf.mxu1 }
 0x191   :  { %v473_v58 = vmax.f32 %v399_v56, 0.0  ;;  %v394_v59 = vadd.f32 %v640_v26, %v1002_v13 }
 0x192   :  { %v783_v14 = vpop.f32.mrf.mxu1 }
 0x193   :  { %v409_v52 = vadd.f32 %v783_v14, %v640_v26  ;;  %v472_v60 = vmax.f32 %v394_v59, 0.0 }
 0x194   :  { %v1004_v15 = vpop.f32.mrf.mxu1 }
 0x195   :  { %v475_v54 = vmax.f32 %v409_v52, 0.0  ;;  %v404_v55 = vadd.f32 %v640_v26, %v1004_v15 }
 0x196   :  { %v786_v16 = vpop.f32.mrf.mxu1 }
 0x197   :  { %v419_v48 = vadd.f32 %v786_v16, %v640_v26  ;;  %v474_v57 = vmax.f32 %v404_v55, 0.0 }
 0x198   :  { %v413_v17 = vpop.f32.mrf.mxu1 }
 0x199   :  { %v477_v50 = vmax.f32 %v419_v48, 0.0  ;;  %v414_v51 = vadd.f32 %v640_v26, %v413_v17 }
 0x19a   :  { %v789_v18 = vpop.f32.mrf.mxu1 }
 0x19b   :  { %v429_v44 = vadd.f32 %v789_v18, %v640_v26  ;;  %v476_v53 = vmax.f32 %v414_v51, 0.0 }
 0x19c   :  { %v423_v19 = vpop.f32.mrf.mxu1 }
 0x19d   :  { %v479_v46 = vmax.f32 %v429_v44, 0.0  ;;  %v424_v47 = vadd.f32 %v640_v26, %v423_v19 }
 0x19e   :  { %v792_v20 = vpop.f32.mrf.mxu1 }
 0x19f   :  { %v439_v40 = vadd.f32 %v792_v20, %v640_v26  ;;  %v478_v49 = vmax.f32 %v424_v47, 0.0 }
 0x1a0   :  { %v433_v21 = vpop.f32.mrf.mxu1 }
 0x1a1   :  { %v481_v42 = vmax.f32 %v439_v40, 0.0  ;;  %v434_v43 = vadd.f32 %v640_v26, %v433_v21 }
 0x1a2   :  { %v795_v22 = vpop.f32.mrf.mxu1 }
 0x1a3   :  { %v449_v36 = vadd.f32 %v795_v22, %v640_v26  ;;  %v480_v45 = vmax.f32 %v434_v43, 0.0 }
 0x1a4   :  { %v443_v23 = vpop.f32.mrf.mxu1 }
 0x1a5   :  { %v483_v38 = vmax.f32 %v449_v36, 0.0  ;;  %v444_v39 = vadd.f32 %v640_v26, %v443_v23 }
 0x1a6   :  { %v798_v24 = vpop.f32.mrf.mxu1 }
 0x1a7   :  { %v459_v32 = vadd.f32 %v798_v24, %v640_v26  ;;  %v482_v41 = vmax.f32 %v444_v39, 0.0 }
 0x1a8   :  { %v453_v25 = vpop.f32.mrf.mxu1 }
 0x1a9   :  { %v485_v34 = vmax.f32 %v459_v32, 0.0  ;;  %v454_v35 = vadd.f32 %v640_v26, %v453_v25 }
 0x1aa   :  { %v801_v27 = vpop.f32.mrf.mxu1 }
 0x1ab   :  { %v469_v28 = vadd.f32 %v801_v27, %v640_v26  ;;  %v484_v37 = vmax.f32 %v454_v35, 0.0 }
 0x1ac   :  { %v463_v29 = vpop.f32.mrf.mxu1 }
 0x1ad   :  { %v487_v30 = vmax.f32 %v469_v28, 0.0  ;;  %v464_v31 = vadd.f32 %v640_v26, %v463_v29 }
 0x1af   :  { %803 = vmatpush3.xpose.msk.msra.mxu0 %vm490_vm3, %v487_v30  ;;  %v486_v33 = vmax.f32 %v464_v31, 0.0 }
 0x1b0   :  { %804 = vmatprep.subr.mxu0 %v843_v11 }
 0x1b3   :  { %805 = vmatpush3.xpose.msk.msra.mxu0 %vm490_vm3, %v486_v33 }
 0x1b4   :  { %806 = vmatprep.subr.mxu0 %v843_v11 }
 0x1b7   :  { %807 = vmatpush3.xpose.msk.msra.mxu0 %vm490_vm3, %v485_v34 }
 0x1b8   :  { %808 = vmatprep.subr.mxu0 %v843_v11 }
 0x1bb   :  { %809 = vmatpush3.xpose.msk.msra.mxu0 %vm490_vm3, %v484_v37 }
 0x1bc   :  { %810 = vmatprep.subr.mxu0 %v843_v11 }
 0x1bf   :  { %811 = vmatpush3.xpose.msk.msra.mxu0 %vm490_vm3, %v483_v38 }
 0x1c0   :  { %812 = vmatprep.subr.mxu0 %v843_v11 }
 0x1c3   :  { %813 = vmatpush3.xpose.msk.msra.mxu0 %vm490_vm3, %v482_v41 }
 0x1c4   :  { %814 = vmatprep.subr.mxu0 %v843_v11 }
 0x1c7   :  { %815 = vmatpush3.xpose.msk.msra.mxu0 %vm490_vm3, %v481_v42 }
 0x1c8   :  { %816 = vmatprep.subr.mxu0 %v843_v11 }
 0x1cb   :  { %817 = vmatpush3.xpose.msk.msra.mxu0 %vm490_vm3, %v480_v45 }
 0x1cc   :  { %818 = vmatprep.subr.mxu0 %v843_v11 }
 0x1cf   :  { %819 = vmatpush3.xpose.msk.msra.mxu0 %vm490_vm3, %v479_v46 }
 0x1d0   :  { %820 = vmatprep.subr.mxu0 %v843_v11 }
 0x1d3   :  { %821 = vmatpush3.xpose.msk.msra.mxu0 %vm490_vm3, %v478_v49 }
 0x1d4   :  { %822 = vmatprep.subr.mxu0 %v843_v11 }
 0x1d7   :  { %823 = vmatpush3.xpose.msk.msra.mxu0 %vm490_vm3, %v477_v50 }
 0x1d8   :  { %824 = vmatprep.subr.mxu0 %v843_v11 }
 0x1db   :  { %825 = vmatpush3.xpose.msk.msra.mxu0 %vm490_vm3, %v476_v53 }
 0x1dc   :  { %826 = vmatprep.subr.mxu0 %v843_v11 }
 0x1df   :  { %827 = vmatpush3.xpose.msk.msra.mxu0 %vm490_vm3, %v475_v54 }
 0x1e0   :  { %828 = vmatprep.subr.mxu0 %v843_v11 }
 0x1e3   :  { %829 = vmatpush3.xpose.msk.msra.mxu0 %vm490_vm3, %v474_v57 }
 0x1e4   :  { %830 = vmatprep.subr.mxu0 %v843_v11 }
 0x1e7   :  { %831 = vmatpush3.xpose.msk.msra.mxu0 %vm490_vm3, %v473_v58 }
 0x1e8   :  { %832 = vmatprep.subr.mxu0 %v843_v11 }
 0x1eb   :  { %833 = vmatpush3.xpose.msk.msra.mxu0 %vm490_vm3, %v472_v60 }
 0x1ee   :  { %835 = vmatmul.mubr.msk.f32.vlgmr.msra.gmra.mxu0 %vm490_vm3, %v488_v61 }
 0x2ae   :  { %v608_v63 = vpop.f32.mrf.mxu0 }
 0x2af   :  { %v609_v0 = vadd.f32 %v608_v63, %v489_v62 }
 0x2b0   :  { %v836_v1 = vpop.f32.mrf.mxu0 }
 0x2b1   :  { %v674_v2 = vmul.f32 -1.442695, %v609_v0 }
 0x2b3   :  { %839 = vpow2.f32 %v674_v2 }
 0x2c0   :  { %v840_v3 = vpop.eup %839 }
 0x2c1   :  { %v615_v4 = vadd.f32 1.0, %v840_v3 }
 0x2c3   :  { %841 = vrcp.f32 %v615_v4 }
 0x2d0   :  { %v842_v5 = vpop.eup %841 }
 0x2d1   :  { %618 = vst [vmem:[%s1060_s7] sm:$0x1] %v842_v5 }

</bundles_post_ra>
